<compile_context>
chip_gen: v5e
topology: v5e:2x2
jax: 0.10.0
libtpu: 0.0.40
codegen_flags: <defaults>
</compile_context>

<pallas_src>
import jax
import jax.numpy as jnp
from jax.experimental import pallas as pl
from jax.experimental.pallas import tpu as pltpu


def _round_up(x, m):
    return (x + m - 1) // m * m


_K_FOLD_MAX = 2048                 # fold whole reduction into one tile up to this K
_K_TILE = 2048                     # reduction tile when K must be streamed
_MAX_TM = 512
_VMEM_LIMIT = 48 * 1024 * 1024     # <= v7x's 64 MiB physical VMEM; fine on v5e/v6e


def _pick_tn(n_padded):
    for t in (512, 256, 128):
        if n_padded % t == 0:
            return t
    return n_padded


# ----------------------------- kernels --------------------------------------

def _linear_kernel_fold_k(x_ref, w_ref, b_ref, o_ref):
    # Whole K fits in a single tile: one MXU matmul, bias added at the only store.
    o_ref[...] = (
        jnp.dot(x_ref[...], w_ref[...], preferred_element_type=jnp.float32)
        + b_ref[...]
    ).astype(o_ref.dtype)


def _linear_kernel_stream_k(x_ref, w_ref, b_ref, o_ref):
    # K is the innermost grid axis; the (tm, tn) f32 output block stays
    # VMEM-resident across k, so accumulate directly into it (no scratch).
    k = pl.program_id(2)

    @pl.when(k == 0)
    def _():
        o_ref[...] = jnp.broadcast_to(b_ref[...], o_ref.shape)

    o_ref[...] += jnp.dot(x_ref[...], w_ref[...],
                          preferred_element_type=jnp.float32)


# ----------------------------- wrappers --------------------------------------

def prepare_linear_params(weight, bias):
    """One-time parameter prep (hoist out of the per-call forward path).

    weight: (output_dim, input_dim)  -- PyTorch nn.Linear layout
    bias:   (output_dim,)
    Returns (w_kn, bias2d, output_dim):
      w_kn:   (Kp, Np) f32 == W^T, zero-padded so N is lane-dense (Np % 128 == 0)
              and, when K must be streamed, Kp % _K_TILE == 0.
      bias2d: (1, Np) f32 zero-padded to match.
    """
    output_dim, input_dim = weight.shape
    n_p = _round_up(max(output_dim, 1), 128)
    k_p = input_dim if input_dim <= _K_FOLD_MAX else _round_up(input_dim, _K_TILE)

    w_kn = jnp.asarray(weight, jnp.float32).T
    if (k_p, n_p) != (input_dim, output_dim):
        w_kn = jnp.pad(w_kn, ((0, k_p - input_dim), (0, n_p - output_dim)))
    b2 = jnp.asarray(bias, jnp.float32).reshape(1, output_dim)
    if n_p != output_dim:
        b2 = jnp.pad(b2, ((0, 0), (0, n_p - output_dim)))
    return w_kn, b2, output_dim


def linear_forward(x, w_kn, bias2d, output_dim, *, xla_fast_path_elems=0):
    """y = x @ W^T + b using pre-prepared (K, N) weights.

    x:       (batch, input_dim) f32
    w_kn:    (Kp, Np) f32 from prepare_linear_params
    bias2d:  (1, Np)  f32 from prepare_linear_params
    Set xla_fast_path_elems > 0 to dispatch tiny problems to plain XLA.
    """
    batch, input_dim = x.shape
    k_p, n_p = w_kn.shape

    # Optional tiny-problem fast path (kernel launch/plumbing would dominate).
    if xla_fast_path_elems and batch * k_p * n_p < xla_fast_path_elems:
        out = x.astype(jnp.float32) @ w_kn[:input_dim, :] + bias2d
        return out[:, :output_dim] if n_p != output_dim else out

    tm = min(_MAX_TM, _round_up(batch, 8))
    tn = _pick_tn(n_p)
    fold_k = input_dim <= _K_FOLD_MAX

    if fold_k:
        # 2-D fully-parallel grid, no K axis, no accumulator.
        x_p = x
        tk = k_p
        grid = (pl.cdiv(batch, tm), n_p // tn)
        kernel = _linear_kernel_fold_k
        in_specs = [
            pl.BlockSpec((tm, tk), lambda i, j: (i, 0)),   # x tile
            pl.BlockSpec((tk, tn), lambda i, j: (0, j)),   # W^T tile
            pl.BlockSpec((1, tn), lambda i, j: (0, j)),    # bias tile
        ]
        out_spec = pl.BlockSpec((tm, tn), lambda i, j: (i, j))
        dim_sem = ("parallel", "parallel")
    else:
        # Large K: stream the reduction.  x must be zero-padded along K so the
        # padded lanes contribute zeros (weight K-padding is already zero).
        x_p = x if k_p == input_dim else jnp.pad(x, ((0, 0), (0, k_p - input_dim)))
        tk = _K_TILE
        grid = (pl.cdiv(batch, tm), n_p // tn, k_p // tk)
        kernel = _linear_kernel_stream_k
        in_specs = [
            pl.BlockSpec((tm, tk), lambda i, j, k: (i, k)),
            pl.BlockSpec((tk, tn), lambda i, j, k: (k, j)),
            pl.BlockSpec((1, tn), lambda i, j, k: (0, j)),
        ]
        out_spec = pl.BlockSpec((tm, tn), lambda i, j, k: (i, j))
        dim_sem = ("parallel", "parallel", "arbitrary")

    cost = pl.CostEstimate(
        flops=2 * batch * n_p * k_p,
        bytes_accessed=4 * (batch * k_p + k_p * n_p + n_p + batch * n_p),
        transcendentals=0,
    )

    out = pl.pallas_call(
        kernel,
        out_shape=jax.ShapeDtypeStruct((batch, n_p), jnp.float32),
        grid_spec=pltpu.PrefetchScalarGridSpec(
            num_scalar_prefetch=0,
            grid=grid,
            in_specs=in_specs,
            out_specs=out_spec,
        ),
        compiler_params=pltpu.CompilerParams(
            dimension_semantics=dim_sem,
            vmem_limit_bytes=_VMEM_LIMIT,
        ),
        cost_estimate=cost,
    )(x_p.astype(jnp.float32), w_kn, bias2d)

    if n_p != output_dim:
        out = out[:, :output_dim]
    return out


def mlp_classifier_forward(x, weight, bias):
    """Convenience wrapper matching MLPClassifier.forward(x) == nn.Linear(x).

    NOTE: for repeated calls, hoist prepare_linear_params() out of the hot
    path (weights are constants); this wrapper re-preps every call.
    """
    w_kn, b2, out_dim = prepare_linear_params(weight, bias)
    return linear_forward(x, w_kn, b2, out_dim)


if __name__ == "__main__":
    # Small shapes consistent with MLPClassifier(input_dim, output_dim, activation)
    batch, input_dim, output_dim = 8, 32, 16

    key = jax.random.PRNGKey(0)
    kx, kw, kb = jax.random.split(key, 3)

    x = jax.random.normal(kx, (batch, input_dim), dtype=jnp.float32)
    # Deterministic PyTorch nn.Linear-style uniform init
    bound = 1.0 / (input_dim ** 0.5)
    weight = jax.random.uniform(kw, (output_dim, input_dim),
                                minval=-bound, maxval=bound, dtype=jnp.float32)
    bias = jax.random.uniform(kb, (output_dim,),
                              minval=-bound, maxval=bound, dtype=jnp.float32)

    # One-time parameter prep (hoisted out of the per-call path).
    w_kn, b2, out_dim = prepare_linear_params(weight, bias)

    out = linear_forward(x, w_kn, b2, out_dim)   # Pallas kernel path
    jax.block_until_ready(out)

    # Reference check against plain JAX
    ref = x @ weight.T + bias
    assert out.shape == (batch, output_dim)
    assert jnp.allclose(out, ref, atol=1e-5, rtol=1e-5)

    print("KERNEL_OK")
</pallas_src>

<mosaic_0001>
module attributes {stable_mosaic.version = 11 : i64} {
  func.func @_linear_kernel_fold_k(%arg0: i32, %arg1: i32, %arg2: memref<8x32xf32, #tpu.memory_space<vmem>>, %arg3: memref<32x128xf32, #tpu.memory_space<vmem>>, %arg4: memref<1x128xf32, #tpu.memory_space<vmem>>, %arg5: memref<8x128xf32, #tpu.memory_space<vmem>>) attributes {dimension_semantics = [#tpu.dimension_semantics<parallel>, #tpu.dimension_semantics<parallel>], iteration_bounds = array<i64: 1, 1>, scalar_prefetch = 0 : i64, scratch_operands = 0 : i64, tpu.core_type = #tpu.core_type<tc>, window_params = [{transform_indices = @transform_0, window_bounds = array<i64: 8, 32>}, {transform_indices = @transform_1, window_bounds = array<i64: 32, 128>}, {transform_indices = @transform_2, window_bounds = array<i64: 1, 128>}, {transform_indices = @transform_3, window_bounds = array<i64: 8, 128>}]} {
    %c0 = arith.constant 0 : index
    %c0_0 = arith.constant 0 : index
    %0 = vector.load %arg2[%c0, %c0_0] : memref<8x32xf32, #tpu.memory_space<vmem>>, vector<8x32xf32>
    %c0_1 = arith.constant 0 : index
    %c0_2 = arith.constant 0 : index
    %1 = vector.load %arg3[%c0_1, %c0_2] : memref<32x128xf32, #tpu.memory_space<vmem>>, vector<32x128xf32>
    %cst = arith.constant dense<0.000000e+00> : vector<8x128xf32>
    %2 = tpu.matmul %0, %1, %cst {dimension_numbers = #tpu.dot_dimension_numbers<[1], [0], [0], [1], [0, 0, 1, 1], [], []>} : vector<8x32xf32>, vector<32x128xf32>, vector<8x128xf32> -> vector<8x128xf32>
    %c0_3 = arith.constant 0 : index
    %c0_4 = arith.constant 0 : index
    %3 = vector.load %arg4[%c0_3, %c0_4] : memref<1x128xf32, #tpu.memory_space<vmem>>, vector<1x128xf32>
    %4 = vector.broadcast %3 : vector<1x128xf32> to vector<8x128xf32>
    %5 = arith.addf %2, %4 : vector<8x128xf32>
    %c0_5 = arith.constant 0 : index
    %c0_6 = arith.constant 0 : index
    %6 = vector.load %arg5[%c0_5, %c0_6] : memref<8x128xf32, #tpu.memory_space<vmem>>, vector<8x128xf32>
    tpu.vector_store %arg5[%c0_5, %c0_6], %5 {strides = array<i32>} : memref<8x128xf32, #tpu.memory_space<vmem>>, vector<8x128xf32>,
    return
  }
  func.func @transform_0(%arg0: i32, %arg1: i32) -> (i32, i32) {
    %c0_i32 = arith.constant 0 : i32
    %c0_i32_0 = arith.constant 0 : i32
    return %arg0, %c0_i32 : i32, i32
  }
  func.func @transform_1(%arg0: i32, %arg1: i32) -> (i32, i32) {
    %c0_i32 = arith.constant 0 : i32
    %c0_i32_0 = arith.constant 0 : i32
    return %c0_i32, %arg1 : i32, i32
  }
  func.func @transform_2(%arg0: i32, %arg1: i32) -> (i32, i32) {
    %c0_i32 = arith.constant 0 : i32
    %c0_i32_0 = arith.constant 0 : i32
    return %c0_i32, %arg1 : i32, i32
  }
  func.func @transform_3(%arg0: i32, %arg1: i32) -> (i32, i32) {
    %c0_i32 = arith.constant 0 : i32
    return %arg0, %arg1 : i32, i32
  }
}

</mosaic_0001>

<bundles_post_ra>
// kernel: tpu_custom_call.1
= control target key start
LH: loop header
LB: loop body
LE: loop exit
PB: predicated region body
PF: predicated region fallthrough
CT: control target
= control target key end

     0   :  { %8 = vsyncpa [#allocation3], 0  ;;  %s219_s0 = inlined_call_operand.hbm [shape: f32[8,32], index: 0, kind: input, shape index: {}]   ;;  %s220_s1 = inlined_call_operand.hbm [shape: f32[32,128], index: 1, kind: input, shape index: {}]   ;;  %s221_s2 = inlined_call_operand.vmem [shape: f32[1,128], index: 2, kind: input, shape index: {}]   ;;  %s222_s3 = inlined_call_operand.hbm [shape: f32[8,128], index: 3, kind: output, shape index: {}]  }
   0x1   :  { %9 = vsyncpa [#allocation6], 0 }
   0x2   :  { %10 = vsyncpa [#allocation4], 0  ;;  %s16_s14 = sshll.u32 %s219_s0, 4  ;;  %s182_s15 = smov [#allocation2]   ;;  %s17_s14 = int_to_ptr.hbm [resolvable:$true] %s16_s14 }
   0x3   :  { %s18_s16 = sshll.u32 %s182_s15, 4  ;;  %s26_s19 = sshll.u32 %s220_s1, 4  ;;  %s19_s16 = int_to_ptr.vmem [resolvable:$true] %s18_s16  ;;  %s27_s19 = int_to_ptr.hbm [resolvable:$true] %s26_s19 }
   0x4   :  { %21 = dma.hbm_to_vmem [thread:$0]  %s17_s14, 128, %s19_s16, [#allocation3]  }
   0x5   :  { %s183_s20 = smov [#allocation5]   ;;  %s184_s22 = smov 128  }
   0x6   :  { %s28_s21 = sshll.u32 %s183_s20, 4  ;;  %s185_s23 = smov 8   ;;  %s29_s21 = int_to_ptr.vmem [resolvable:$true] %s28_s21 }
   0x7   :  { %34 = dma.hbm_to_vmem [thread:$0]  %s27_s19, 512, %s29_s21, [#allocation6], %s184_s22, %s184_s22, %s185_s23  }
   0x8   :  { %176 = dma.done.wait [#allocation3], 128  }
   0x9   :  { %177 = vsyncadd [#allocation3], 4294967168 }
   0xa   :  { %178 = dma.done.wait [#allocation6], 512  }
   0xb   :  { %179 = vsyncadd [#allocation6], 4294966784  ;;  %v49_v0 = vld [vmem:[#allocation5 + $0x18] sm:$0xff]  ;;  %v48_v1 = vld [vmem:[#allocation5 + $0x10] sm:$0xff]  ;;  %vm54_vm0 = vcmask 261120   ;;  %s186_s24 = smov [#allocation7]  }
   0xc   :  { %70 = vmatpush.msra.mxu0 %v49_v0  ;;  %v47_v2 = vld [vmem:[#allocation5 + $0x8] sm:$0xff]  ;;  %v46_v3 = vld [vmem:[#allocation5] sm:$0xff]  ;;  %v45_v4 = vld [vmem:[#allocation2] sm:$0xff]  ;;  %s84_s25 = sshll.u32 %s186_s24, 4  ;;  %s86_s28 = sshll.u32 %s222_s3, 4  ;;  %s85_s25 = int_to_ptr.vmem [resolvable:$true] %s84_s25  ;;  %s87_s28 = int_to_ptr.hbm [resolvable:$true] %s86_s28 }
   0xd   :  { %v103_v5 = vld [vmem:[%s221_s2] ss:$0 sm:$0xff] }
   0xe   :  { %71 = vmatpush.msra.mxu0 %v48_v1 }
  0x10   :  { %72 = vmatpush.msra.mxu0 %v47_v2 }
  0x12   :  { %73 = vmatpush.msra.mxu0 %v46_v3 }
  0x13   :  { %97 = vmatmul.msk.f32.vlgmr.msra.gmra.mxu0 %vm54_vm0, %v45_v4 }
  0x90   :  { %v75_v6 = vpop.f32.mrf.mxu0 }
  0x91   :  { %v76_v7 = vadd.f32 %v103_v5, %v75_v6 }
  0x93   :  { %78 = vst [vmem:[#allocation7] sm:$0xff] %v76_v7 }
  0x94   :  { %89 = dma.vmem_to_hbm [thread:$0]  %s85_s25, 128, %s87_s28, [#allocation4]  }
  0x95   :  { %180 = dma.done.wait [#allocation4], 128  }
  0x96   :  { %181 = vsyncadd [#allocation4], 4294967168 }
  0x97   :  { %94 = vsyncpa [#allocation3], 1 }
  0x98   :  { %95 = vsyncpa [#allocation6], 1 }
  0x99   :  { %96 = vsyncpa [#allocation4], 1 }

</bundles_post_ra>
